<compile_context>
chip_gen: v7x
topology: tpu7x:2x2x1
jax: 0.10.0
libtpu: 0.0.40
codegen_flags: <defaults>
</compile_context>

<pallas_src>
import jax
import jax.numpy as jnp
from jax.experimental import pallas as pl
from jax.experimental.pallas import tpu as pltpu


# ---------------------------------------------------------------------------
# kernels
# ---------------------------------------------------------------------------
def _se_fused_kernel(x_ref, w1s_ref, w2t_ref, o_ref):
    """One batch element per grid step: pooled gate + channel rescale, fused."""
    # x_ref/o_ref: (1, C, S); w1s_ref: (C, Ch) with 1/S folded in; w2t_ref: (Ch, C)
    y = jnp.sum(x_ref[...].astype(jnp.float32), axis=-1)                  # (1, C)
    h = jnp.maximum(
        jnp.dot(y, w1s_ref[...], preferred_element_type=jnp.float32), 0.0)
    g = jax.nn.sigmoid(
        jnp.dot(h, w2t_ref[...], preferred_element_type=jnp.float32))     # (1, C)
    o_ref[...] = (x_ref[...].astype(jnp.float32) * g[:, :, None]).astype(o_ref.dtype)


def _se_gate_kernel(x_ref, w1s_ref, w2t_ref, gate_ref, acc_ref):
    """Phase 1: spatial-sum accumulation over tiles + FC gate at finalize."""
    si = pl.program_id(1)

    @pl.when(si == 0)
    def _init():
        acc_ref[...] = jnp.zeros_like(acc_ref)

    # Running per-channel sum: cheap VPU/XLU work, DMA stream stays the bottleneck.
    acc_ref[...] += jnp.sum(x_ref[...].astype(jnp.float32), axis=-1)      # (1, C)

    @pl.when(si == pl.num_programs(1) - 1)
    def _finalize():
        y = acc_ref[...]                                                  # (1, C) sums
        h = jnp.maximum(
            jnp.dot(y, w1s_ref[...], preferred_element_type=jnp.float32), 0.0)
        g = jax.nn.sigmoid(
            jnp.dot(h, w2t_ref[...], preferred_element_type=jnp.float32))  # (1, C)
        gate_ref[...] = g[:, :, None]                                     # (1, C, 1)


def _se_rescale_kernel(x_ref, gate_ref, o_ref):
    """Phase 2: elementwise channel rescale with precomputed gates."""
    # x_ref/o_ref: (1, C, s_tile); gate_ref: (1, C, 1) f32
    o_ref[...] = (x_ref[...].astype(jnp.float32) * gate_ref[...]).astype(o_ref.dtype)


# ---------------------------------------------------------------------------
# helpers
# ---------------------------------------------------------------------------
def _vmem_limit(n_bufs, block_bytes):
    """Derive a VMEM limit from pipelined block sizes, with headroom (v7x-safe)."""
    need = n_bufs * block_bytes + (4 << 20)
    return int(min(max(need, 16 << 20), 48 << 20))


def _choose_s_tile(S, C, itemsize, max_block_bytes=4 << 20):
    """Largest spatial tile that is a multiple of 128, divides S and fits budget."""
    if S % 128 != 0:
        # TODO(synk): pad/mask the spatial axis for S not a multiple of 128;
        # for now fall back to a single full-extent spatial block.
        return S
    max_lanes = max(128, (max_block_bytes // (C * itemsize)) // 128 * 128)
    tile = (min(S, max_lanes) // 128) * 128
    while tile > 128 and S % tile != 0:
        tile -= 128
    if tile < 128 or S % tile != 0:
        return S
    return tile


# ---------------------------------------------------------------------------
# wrapper
# ---------------------------------------------------------------------------
def se_block(x_ncdhw, w1, w2, *, s_tile=None, fused_slab_limit_bytes=4 << 20):
    """SE block forward.

    x_ncdhw : (B, C, D, H, W)   float32 or bfloat16
    w1      : (C//r, C)         first Linear weight (PyTorch layout, bias-free)
    w2      : (C, C//r)         second Linear weight (PyTorch layout, bias-free)
    s_tile  : optional spatial tile size (forces the two-phase path)
    returns : (B, C, D, H, W), same dtype as x
    """
    B, C, D, H, W = x_ncdhw.shape
    S = D * H * W
    Ch = w1.shape[0]
    dtype = x_ncdhw.dtype
    itemsize = jnp.dtype(dtype).itemsize

    x = x_ncdhw.reshape(B, C, S)
    # Fold the 1/S mean factor into W1 so the kernels only sum.
    w1s = (w1.T.astype(jnp.float32) * jnp.float32(1.0 / S))   # (C, Ch)
    w2t = w2.T.astype(jnp.float32)                            # (Ch, C)

    slab_bytes = C * S * itemsize

    # -------------------- fused fast path: grid over B only -----------------
    if s_tile is None and slab_bytes <= fused_slab_limit_bytes:
        out = pl.pallas_call(
            _se_fused_kernel,
            out_shape=jax.ShapeDtypeStruct((B, C, S), dtype),
            grid_spec=pltpu.PrefetchScalarGridSpec(
                num_scalar_prefetch=0,
                grid=(B,),
                in_specs=[
                    pl.BlockSpec((1, C, S), lambda b: (b, 0, 0)),
                    pl.BlockSpec((C, Ch), lambda b: (0, 0)),
                    pl.BlockSpec((Ch, C), lambda b: (0, 0)),
                ],
                out_specs=pl.BlockSpec((1, C, S), lambda b: (b, 0, 0)),
            ),
            compiler_params=pltpu.CompilerParams(
                dimension_semantics=("parallel",),
                vmem_limit_bytes=_vmem_limit(4, slab_bytes),
            ),
            cost_estimate=pl.CostEstimate(
                flops=2 * B * C * S + 4 * B * C * Ch,
                transcendentals=B * C,
                bytes_accessed=2 * B * C * S * itemsize,
            ),
        )(x, w1s, w2t)
        return out.reshape(B, C, D, H, W)

    # -------------------- two-phase path: pool+gate, then rescale -----------
    if s_tile is None:
        s_tile = _choose_s_tile(S, C, itemsize)
    assert S % s_tile == 0 and (s_tile == S or s_tile % 128 == 0), (
        f"invalid s_tile={s_tile} for S={S}")
    n_s = S // s_tile
    block_bytes = C * s_tile * itemsize

    # Phase 1: per-batch pooled gate (B, C, 1) in f32.
    gates = pl.pallas_call(
        _se_gate_kernel,
        out_shape=jax.ShapeDtypeStruct((B, C, 1), jnp.float32),
        grid_spec=pltpu.PrefetchScalarGridSpec(
            num_scalar_prefetch=0,
            grid=(B, n_s),
            in_specs=[
                pl.BlockSpec((1, C, s_tile), lambda b, s: (b, 0, s)),
                pl.BlockSpec((C, Ch), lambda b, s: (0, 0)),
                pl.BlockSpec((Ch, C), lambda b, s: (0, 0)),
            ],
            out_specs=pl.BlockSpec((1, C, 1), lambda b, s: (b, 0, 0)),
            scratch_shapes=[pltpu.VMEM((1, C), jnp.float32)],
        ),
        compiler_params=pltpu.CompilerParams(
            dimension_semantics=("parallel", "arbitrary"),
            vmem_limit_bytes=_vmem_limit(2, block_bytes),
        ),
        cost_estimate=pl.CostEstimate(
            flops=B * C * S + 4 * B * C * Ch,
            transcendentals=B * C,
            bytes_accessed=B * C * S * itemsize + B * C * 4,
        ),
    )(x, w1s, w2t)

    # Phase 2: elementwise rescale, fully parallel over (B, spatial tiles).
    out = pl.pallas_call(
        _se_rescale_kernel,
        out_shape=jax.ShapeDtypeStruct((B, C, S), dtype),
        grid_spec=pltpu.PrefetchScalarGridSpec(
            num_scalar_prefetch=0,
            grid=(B, n_s),
            in_specs=[
                pl.BlockSpec((1, C, s_tile), lambda b, s: (b, 0, s)),
                pl.BlockSpec((1, C, 1), lambda b, s: (b, 0, 0)),
            ],
            out_specs=pl.BlockSpec((1, C, s_tile), lambda b, s: (b, 0, s)),
        ),
        compiler_params=pltpu.CompilerParams(
            dimension_semantics=("parallel", "parallel"),
            vmem_limit_bytes=_vmem_limit(4, block_bytes),
        ),
        cost_estimate=pl.CostEstimate(
            flops=B * C * S,
            transcendentals=0,
            bytes_accessed=2 * B * C * S * itemsize + B * C * 4,
        ),
    )(x, gates)

    return out.reshape(B, C, D, H, W)


# ---------------------------------------------------------------------------
# pure-JAX reference (matches the PyTorch forward, bias-free Linears)
# ---------------------------------------------------------------------------
def se_block_ref(x, w1, w2):
    y = jnp.mean(x.astype(jnp.float32), axis=(2, 3, 4))          # (B, C)
    y = jnp.maximum(y @ w1.T.astype(jnp.float32), 0.0)           # (B, C//r)
    y = jax.nn.sigmoid(y @ w2.T.astype(jnp.float32))             # (B, C)
    return x.astype(jnp.float32) * y[:, :, None, None, None]


if __name__ == "__main__":
    key = jax.random.PRNGKey(0)
    kx, k1, k2 = jax.random.split(key, 3)

    # Small shapes consistent with SE_Block(ch_in=32, reduction=16)
    B, C, D, H, W = 2, 32, 8, 8, 16      # S = 1024
    reduction = 16
    Ch = C // reduction                  # hidden = 2

    x = jax.random.normal(kx, (B, C, D, H, W), dtype=jnp.float32)
    w1 = 0.1 * jax.random.normal(k1, (Ch, C), dtype=jnp.float32)   # Linear(C, C//r)
    w2 = 0.1 * jax.random.normal(k2, (C, Ch), dtype=jnp.float32)   # Linear(C//r, C)

    ref = se_block_ref(x, w1, w2)

    # Fused fast path (grid over B, whole spatial slab per block).
    out_fused = se_block(x, w1, w2)
    jax.block_until_ready(out_fused)
    assert out_fused.shape == x.shape
    assert jnp.allclose(out_fused, ref, atol=1e-5, rtol=1e-5), "fused path mismatch"

    # Two-phase tiled path (grid over B and spatial tiles of 512 lanes).
    out_tiled = se_block(x, w1, w2, s_tile=512)
    jax.block_until_ready(out_tiled)
    assert jnp.allclose(out_tiled, ref, atol=1e-5, rtol=1e-5), "tiled path mismatch"

    # bf16 I/O (halves HBM traffic; f32 accumulation inside the kernels).
    x_bf16 = x.astype(jnp.bfloat16)
    out_bf16 = se_block(x_bf16, w1, w2, s_tile=512)
    jax.block_until_ready(out_bf16)
    ref_bf16 = se_block_ref(x_bf16, w1, w2)
    assert jnp.allclose(out_bf16.astype(jnp.float32), ref_bf16, atol=5e-2, rtol=5e-2), \
        "bf16 path mismatch"

    print("KERNEL_OK")
</pallas_src>

<mosaic_0001>
module attributes {stable_mosaic.version = 11 : i64} {
  func.func @_se_fused_kernel(%arg0: i32, %arg1: memref<1x32x1024xf32, #tpu.memory_space<vmem>>, %arg2: memref<32x2xf32, #tpu.memory_space<vmem>>, %arg3: memref<2x32xf32, #tpu.memory_space<vmem>>, %arg4: memref<1x32x1024xf32, #tpu.memory_space<vmem>>) attributes {dimension_semantics = [#tpu.dimension_semantics<parallel>], iteration_bounds = array<i64: 2>, scalar_prefetch = 0 : i64, scratch_operands = 0 : i64, tpu.core_type = #tpu.core_type<tc>, window_params = [{transform_indices = @transform_0, window_bounds = array<i64: 1, 32, 1024>}, {pipeline_mode = #tpu.pipeline_mode<synchronous>, transform_indices = @transform_1, window_bounds = array<i64: 32, 2>}, {pipeline_mode = #tpu.pipeline_mode<synchronous>, transform_indices = @transform_2, window_bounds = array<i64: 2, 32>}, {transform_indices = @transform_3, window_bounds = array<i64: 1, 32, 1024>}]} {
    %c0 = arith.constant 0 : index
    %c0_0 = arith.constant 0 : index
    %c0_1 = arith.constant 0 : index
    %0 = vector.load %arg1[%c0, %c0_0, %c0_1] : memref<1x32x1024xf32, #tpu.memory_space<vmem>>, vector<1x32x1024xf32>
    %cst = arith.constant dense<0.000000e+00> : vector<1x32xf32>
    %1 = vector.multi_reduction <add>, %0, %cst [2] : vector<1x32x1024xf32> to vector<1x32xf32>
    %c0_2 = arith.constant 0 : index
    %c0_3 = arith.constant 0 : index
    %2 = vector.load %arg2[%c0_2, %c0_3] : memref<32x2xf32, #tpu.memory_space<vmem>>, vector<32x2xf32>
    %cst_4 = arith.constant dense<0.000000e+00> : vector<1x2xf32>
    %3 = tpu.matmul %1, %2, %cst_4 {dimension_numbers = #tpu.dot_dimension_numbers<[1], [0], [0], [1], [0, 0, 1, 1], [], []>} : vector<1x32xf32>, vector<32x2xf32>, vector<1x2xf32> -> vector<1x2xf32>
    %cst_5 = arith.constant 0.000000e+00 : f32
    %4 = vector.broadcast %cst_5 : f32 to vector<1x2xf32>
    %5 = arith.maximumf %3, %4 : vector<1x2xf32>
    %c0_6 = arith.constant 0 : index
    %c0_7 = arith.constant 0 : index
    %6 = vector.load %arg3[%c0_6, %c0_7] : memref<2x32xf32, #tpu.memory_space<vmem>>, vector<2x32xf32>
    %cst_8 = arith.constant dense<0.000000e+00> : vector<1x32xf32>
    %7 = tpu.matmul %5, %6, %cst_8 {dimension_numbers = #tpu.dot_dimension_numbers<[1], [0], [0], [1], [0, 0, 1, 1], [], []>} : vector<1x2xf32>, vector<2x32xf32>, vector<1x32xf32> -> vector<1x32xf32>
    %8 = arith.negf %7 : vector<1x32xf32>
    %9 = math.exp %8 : vector<1x32xf32>
    %cst_9 = arith.constant 1.000000e+00 : f32
    %10 = vector.broadcast %cst_9 : f32 to vector<1x32xf32>
    %11 = arith.addf %10, %9 : vector<1x32xf32>
    %12 = arith.divf %10, %11 : vector<1x32xf32>
    %c0_10 = arith.constant 0 : index
    %c0_11 = arith.constant 0 : index
    %c0_12 = arith.constant 0 : index
    %13 = vector.load %arg1[%c0_10, %c0_11, %c0_12] : memref<1x32x1024xf32, #tpu.memory_space<vmem>>, vector<1x32x1024xf32>
    %14 = vector.shape_cast %12 : vector<1x32xf32> to vector<1x32x1xf32>
    %15 = vector.broadcast %14 : vector<1x32x1xf32> to vector<1x32x1024xf32>
    %16 = arith.mulf %13, %15 : vector<1x32x1024xf32>
    %c0_13 = arith.constant 0 : index
    %c0_14 = arith.constant 0 : index
    %c0_15 = arith.constant 0 : index
    %17 = vector.load %arg4[%c0_13, %c0_14, %c0_15] : memref<1x32x1024xf32, #tpu.memory_space<vmem>>, vector<1x32x1024xf32>
    tpu.vector_store %arg4[%c0_13, %c0_14, %c0_15], %16 {strides = array<i32>} : memref<1x32x1024xf32, #tpu.memory_space<vmem>>, vector<1x32x1024xf32>,
    return
  }
  func.func @transform_0(%arg0: i32) -> (i32, i32, i32) {
    %c0_i32 = arith.constant 0 : i32
    %c0_i32_0 = arith.constant 0 : i32
    %c0_i32_1 = arith.constant 0 : i32
    return %arg0, %c0_i32, %c0_i32_0 : i32, i32, i32
  }
  func.func @transform_1(%arg0: i32) -> (i32, i32) {
    %c0_i32 = arith.constant 0 : i32
    %c0_i32_0 = arith.constant 0 : i32
    %c0_i32_1 = arith.constant 0 : i32
    return %c0_i32, %c0_i32_0 : i32, i32
  }
  func.func @transform_2(%arg0: i32) -> (i32, i32) {
    %c0_i32 = arith.constant 0 : i32
    %c0_i32_0 = arith.constant 0 : i32
    %c0_i32_1 = arith.constant 0 : i32
    return %c0_i32, %c0_i32_0 : i32, i32
  }
  func.func @transform_3(%arg0: i32) -> (i32, i32, i32) {
    %c0_i32 = arith.constant 0 : i32
    %c0_i32_0 = arith.constant 0 : i32
    %c0_i32_1 = arith.constant 0 : i32
    return %arg0, %c0_i32, %c0_i32_0 : i32, i32, i32
  }
}

</mosaic_0001>

<bundles_post_ra>
// kernel: tpu_custom_call.1
= control target key start
LH: loop header
LB: loop body
LE: loop exit
PB: predicated region body
PF: predicated region fallthrough
CT: control target
= control target key end

     0   :  { %8 = vsyncpa [#allocation3], 0  ;;  %s1232_s0 = inlined_call_operand.hbm [shape: f32[2,32,1024], index: 0, kind: input, shape index: {}]   ;;  %s1233_s1 = inlined_call_operand.vmem [shape: f32[32,2], index: 1, kind: input, shape index: {}]   ;;  %s1234_s2 = inlined_call_operand.vmem [shape: f32[2,32], index: 2, kind: input, shape index: {}]   ;;  %s1235_s3 = inlined_call_operand.hbm [shape: f32[2,32,1024], index: 3, kind: output, shape index: {}]  }
   0x1   :  { %10 = vsyncpa [#allocation3 + $0x1], 0 }
   0x2   :  { %11 = vsyncpa [#allocation4], 0 }
   0x3   :  { %13 = vsyncpa [#allocation4 + $0x1], 0  ;;  %s854_s12 = smov 0   ;;  %s856_s13 = smov 0  }
   0x4   :  { %s858_s14 = smov 0   ;;  %s860_s15 = smov 0  }
   0x5 LB: > { %s875_s16 = sadd.s32 4294967295, %s823_s15   ;;  %s621_s17 = sadd.s32 4294967294, %s823_s15   ;;  %s823_s15 = sphi %s860_s15, %s1248_s15   ;;  %s819_s14 = sphi %s858_s14, %s1247_s14   ;;  %s815_s13 = sphi %s856_s13, %s1246_s13   ;;  %s811_s12 = sphi %s854_s12, %s1245_s12  }
   0x6   : > { %s879_s18 = sadd.s32 1, %s823_s15   ;;  %s26_s19 = sadd.s32 1, %s819_s14 }
   0x7   : > { %s23_s20 = ssub.s32 %s823_s15, %s879_s18  ;;  %p33_p0 = scmp.ne.s32.totalorder %s819_s14, %s815_s13 }
   0x8   : > { %p24_p1 = scmp.eq.s32.totalorder %s23_s20, 0  ;;  %p34_p2 = scmp.eq.s32.totalorder %s823_s15, 0 }
   0x9   : > { %p39_p3 = scmp.ne.s32.totalorder %s815_s13, %s811_s12  ;;  %p40_p4 = scmp.eq.s32.totalorder %s875_s16, 0 }
   0xa   : > { %s891_s21 = scalar_select %p24_p1, %s819_s14, %s26_s19  }
   0xb   : > { %p893_p5 = por %p34_p2, %p33_p0  ;;  %p897_p6 = por %p40_p4, %p39_p3 }
   0xc   : > { %p105_p7 = scmp.eq.s32.totalorder %s875_s16, 1  ;;  %p111_p8 = scmp.eq.s32.totalorder %s621_s17, 1 }
   0xd   : > { %p682_p10 = scmp.lt.s32.totalorder %s823_s15, 2  ;;  %s137_s26 = sand.u32 1, %s819_s14  }
   0xe   : > { %p904_p11 = por %p105_p7, %p33_p0  ;;  %p908_p12 = por %p111_p8, %p39_p3 }
   0xf   : > { %s639_s27 = sshll.u32 %s823_s15, 12  ;;  %s624_s28 = sshll.u32 %s137_s26, 8 }
  0x10   : > { %s1239_s24 = scalar_select %p904_p11, 1, 0 }
  0x11   : > { %s1240_s25 = scalar_select %p908_p12, 1, 0 }
  0x12   : > { %s917_s4 = scalar_lea.hbm %s1232_s0, %s639_s27  ;;  %s141_s5 = scalar_lea.vmem [#allocation2], %s624_s28 }
  0x13   : > { %s148_s6 = sshll.u32 %s141_s5, 4  ;;  %p921_p13 = pnand %p682_p10, %p893_p5  ;;  %s925_s6 = int_to_ptr.vmem [resolvable:$true] %s148_s6 }
  0x14   : > { %s927_s8 = scalar_lea.sflag [#allocation3], %s137_s26  ;;  %s727_s9 = scalar_lea.hbm %s917_s4, 4096 }
  0x15   : > { %p728_p0 = scmp.ne.s32.totalorder %s917_s4, %s727_s9  ;;  %p729_p1 = pneg %p921_p13 }
  0x16   : > { %s732_s17 = scalar_lea.hbm %s1232_s0, 8192  ;;  %p733_p4 = scmp.lt.u32.totalorder %s917_s4, %s1232_s0 }
  0x17   : > { %p730_p2 = pnand %p729_p1, %p728_p0  ;;  %p734_p5 = scmp.lt.u32.totalorder %s732_s17, %s727_s9 }
  0x18   : > { %p736_p8 = scmp.lt.u32.totalorder %s727_s9, %s917_s4 }
  0x19   : > { %p731_p3 = pneg %p730_p2  ;;  %p735_p7 = por %p734_p5, %p733_p4 }
  0x1b   : > { %p737_p10 = por %p736_p8, %p735_p7 }
  0x1d   : > { %p738_p9 = pnand %p737_p10, %p731_p3 }
  0x1f   : > { %741 = shalt.err (!%p738_p9)
}
  0x20   : > { %s742_s22 = scalar_lea.vmem %s925_s6, 4096  ;;  %s825_s26 = smov [#allocation2]  }
  0x21   : > { %p743_p0 = scmp.ne.s32.totalorder %s925_s6, %s742_s22  ;;  %s747_s27 = sshll.u32 %s825_s26, 4  ;;  %s748_s27 = int_to_ptr.vmem [resolvable:$false] %s747_s27 }
  0x22   : > { %s749_s28 = scalar_lea.vmem %s748_s27, 8192  ;;  %p750_p11 = scmp.lt.s32.totalorder %s925_s6, %s748_s27 }
  0x23   : > { %p745_p2 = pnand %p743_p0, %p729_p1  ;;  %p751_p4 = scmp.lt.s32.totalorder %s749_s28, %s742_s22 }
  0x25   : > { %p746_p12 = pneg %p745_p2  ;;  %p752_p5 = por %p751_p4, %p750_p11 }
  0x27   : > { %p753_p7 = pnand %p752_p5, %p746_p12 }
  0x29   : > { %756 = shalt.err (!%p753_p7)
}
  0x2a   : > { %s826_s29 = smov 1024   ;;  %s827_s30 = smov 64  }
  0x2b   : > { %677 = dma.hbm_to_vmem [thread:$0]  (!%p921_p13), %s917_s4, 4096, %s925_s6, %s927_s8, %s826_s29, %s826_s29, %s827_s30  }
  0x2c   : > { %p627_p9 = scmp.ge.s32.totalorder %s823_s15, 1  ;;  %p156_p1 = scmp.lt.s32.totalorder %s823_s15, 3 }
  0x2e   : > { %p157_p3 = pnand %p627_p9, %p156_p1 }
  0x2f   : > { %s958_s5 = sand.u32 (!%p157_p3), 1, %s815_s13  }
  0x30   : > { %160 = sbr.rel (%p157_p3) target bundleno = 823 (0x337), region = 32  ;;  %s628_s9 = sshll.u32 (!%p157_p3), %s958_s5, 8 }
  0x31   : > { %s163_s10 = scalar_lea.sflag (!%p157_p3), [#allocation3], %s958_s5  ;;  %s964_s11 = scalar_lea.vmem (!%p157_p3), [#allocation2], %s628_s9 }
  0x37   : > { %802 = dma.done.wait (%p897_p6), %s163_s10, 4096  }
  0x38   : > { %804 = vsyncadd (%p897_p6), %s163_s10, 4294963200  ;;  %v971_v0 = vld [vmem:[%s964_s11] sm:$0xff]  ;;  %v974_v1 = vld [vmem:[%s964_s11 + $0x8] sm:$0xff]  ;;  %v828_v60 = vmov 0.0|0.0   ;;  %vm829_vm0 = vmmov 0   ;;  %vm276_vm1 = vcmask 130112  }
  0x39   : > { %v977_v2 = vld [vmem:[%s964_s11 + $0x10] sm:$0xff]  ;;  %v221_v3 = vadd.f32 %v974_v1, %v971_v0  ;;  %v982_v4 = vld [vmem:[%s964_s11 + $0x18] sm:$0xff]  ;;  %v985_v5 = vld [vmem:[%s964_s11 + $0x80] sm:$0xff]  ;;  %664 = vmatprep.subr.bf16.mxu0 %v828_v60  ;;  %vm283_vm2 = vcmask 195712   ;;  %vm290_vm3 = vcmask 261312   ;;  %vm292_vm4 = vcmask 261120  }
  0x3a   : > { %v989_v7 = vld [vmem:[%s964_s11 + $0x88] sm:$0xff]  ;;  %v992_v8 = vld [vmem:[%s964_s11 + $0x90] sm:$0xff]  ;;  %v995_v9 = vld [vmem:[%s964_s11 + $0x20] sm:$0xff]  ;;  %vm371_vm5 = vcmask 1041408   ;;  %vm367_vm6 = vcmask 15360   ;;  %s1123_s27 = scalar_lea.vmem [#allocation5], %s628_s9 }
  0x3b   : > { %v222_v6 = vadd.f32 %v221_v3, %v977_v2  ;;  %v239_v10 = vadd.f32 %v989_v7, %v985_v5  ;;  %v1001_v12 = vld [vmem:[%s964_s11 + $0x98] sm:$0xff]  ;;  %v1004_v13 = vld [vmem:[%s964_s11 + $0x40] sm:$0xff]  ;;  %v1007_v14 = vld [vmem:[%s964_s11 + $0x48] sm:$0xff]  ;;  %s640_s28 = sshll.u32 %s875_s16, 12  ;;  %s548_s29 = sshll.u32 %s1123_s27, 4  ;;  %s1176_s29 = int_to_ptr.vmem [resolvable:$true] %s548_s29 }
  0x3c   : > { %v1010_v15 = vld [vmem:[%s964_s11 + $0x28] sm:$0xff]  ;;  %v1014_v17 = vld [vmem:[%s964_s11 + $0x50] sm:$0xff]  ;;  %v230_v18 = vadd.f32 %v1007_v14, %v1004_v13  ;;  %v1023_v21 = vld [vmem:[%s964_s11 + $0xa0] sm:$0xff]  ;;  %s1174_s9 = scalar_lea.hbm %s1235_s3, %s640_s28  ;;  %s535_s10 = scalar_lea.sflag [#allocation4], %s958_s5 }
  0x3d   : > { %v223_v11 = vadd.f32 %v222_v6, %v982_v4  ;;  %v240_v16 = vadd.f32 %v239_v10, %v992_v8  ;;  %v1019_v19 = vld [vmem:[%s964_s11 + $0x30] sm:$0xff]  ;;  %v1026_v22 = vld [vmem:[%s964_s11 + $0x58] sm:$0xff]  ;;  %v1031_v25 = vld [vmem:[%s964_s11 + $0xc0] sm:$0xff]  ;;  %p1242_p11 = scmp.ne.s32.totalorder %s1239_s24, 0  ;;  %s831_s23 = smov [#allocation5]  }
  0x3e   : > { %v231_v24 = vadd.f32 %v230_v18, %v1014_v17  ;;  %v1034_v26 = vld [vmem:[%s964_s11 + $0xc8] sm:$0xff]  ;;  %v1037_v27 = vld [vmem:[%s964_s11 + $0xd0] sm:$0xff]  ;;  %v1044_v30 = vld [vmem:[%s964_s11 + $0x60] sm:$0xff]  ;;  %s761_s4 = sshll.u32 %s831_s23, 4  ;;  %s762_s4 = int_to_ptr.vmem [resolvable:$false] %s761_s4 }
  0x3f   : > { %v224_v20 = vadd.f32 %v223_v11, %v995_v9  ;;  %v241_v23 = vadd.f32 %v240_v16, %v1001_v12  ;;  %v1041_v29 = vld [vmem:[%s964_s11 + $0xa8] sm:$0xff]  ;;  %v248_v31 = vadd.f32 %v1034_v26, %v1031_v25  ;;  %v1049_v32 = vld [vmem:[%s964_s11 + $0x38] sm:$0xff]  ;;  %v1058_v37 = vld [vmem:[%s964_s11 + $0xb0] sm:$0xff]  ;;  %v830_v11 = vmov 0.0   ;;  %s763_s6 = scalar_lea.vmem %s762_s4, 8192  ;;  %p764_p8 = scmp.lt.s32.totalorder %s1176_s29, %s762_s4 }
  0x40   : > { %v232_v34 = vadd.f32 %v231_v24, %v1026_v22  ;;  %v1054_v35 = vld [vmem:[%s964_s11 + $0xd8] sm:$0xff]  ;;  %v1061_v38 = vld [vmem:[%s964_s11 + $0x68] sm:$0xff]  ;;  %v1067_v42 = vld [vmem:[%s964_s11 + $0xe0] sm:$0xff]  ;;  %656 = vmatprep.mubr.msk.f32.mxu0 %vm829_vm0, %v830_v11  ;;  %659 = vmatprep.subr.mxu1 %v830_v11  ;;  %v265_v16 = vlaneseq }
  0x41   : > { %v225_v28 = vadd.f32 %v224_v20, %v1010_v15  ;;  %v242_v33 = vadd.f32 %v241_v23, %v1023_v21  ;;  %v249_v39 = vadd.f32 %v248_v31, %v1037_v27  ;;  %v1071_v44 = vld [vmem:[%s964_s11 + $0xb8] sm:$0xff]  ;;  %v1074_v45 = vld [vmem:[%s964_s11 + $0x70] sm:$0xff]  ;;  %v1080_v49 = vld [vmem:[%s964_s11 + $0xe8] sm:$0xff]  ;;  %661 = vmatprep.mubr.msk.f32.mxu1 %vm829_vm0, %v830_v11 }
  0x42   : > { %v233_v41 = vadd.f32 %v232_v34, %v1044_v30  ;;  %v1083_v50 = vld [vmem:[%s964_s11 + $0x78] sm:$0xff]  ;;  %v1089_v54 = vld [vmem:[%s964_s11 + $0xf0] sm:$0xff]  ;;  %v257_v61 = vld [vmem:[%s1233_s1] sm:$0xff]  ;;  %v266_v18 = vand.u32 127, %v265_v16  ;;  %v268_v20 = vshrl.u32 %v265_v16, 7 }
  0x43   : > { %v226_v36 = vadd.f32 %v225_v28, %v1019_v19  ;;  %v243_v40 = vadd.f32 %v242_v33, %v1041_v29  ;;  %v250_v46 = vadd.f32 %v249_v39, %v1054_v35  ;;  %v1094_v57 = vld [vmem:[%s964_s11 + $0xf8] sm:$0xff]  ;;  %v258_v62 = vld [vmem:[%s1233_s1 + $0x8] sm:$0xff]  ;;  %v259_v3 = vld [vmem:[%s1233_s1 + $0x10] sm:$0xff]  ;;  %s757_s11 = scalar_lea.vmem %s1176_s29, 4096 }
  0x44   : > { %v234_v48 = vadd.f32 %v233_v41, %v1061_v38  ;;  %v665_v63 = vpack.c.bf16 %v258_v62, %v257_v61  ;;  %v260_v6 = vld [vmem:[%s1233_s1 + $0x18] sm:$0xff]  ;;  %v271_v23 = vadd.s32 4294967288, %v266_v18  ;;  %v278_v24 = vadd.s32 4294967280, %v266_v18  ;;  %p758_p6 = scmp.ne.s32.totalorder %s1176_s29, %s757_s11  ;;  %p765_p10 = scmp.lt.s32.totalorder %s763_s6, %s757_s11 }
  0x45   : > { %v227_v43 = vadd.f32 %v226_v36, %v1049_v32  ;;  %v244_v47 = vadd.f32 %v243_v40, %v1058_v37  ;;  %v251_v51 = vadd.f32 %v250_v46, %v1067_v42  ;;  %v668_v10 = vpack.c.bf16 %v260_v6, %v259_v3 }
  0x46   : > { %v235_v53 = vadd.f32 %v234_v48, %v1074_v45  ;;  %666 = vmatpush3.bf16.msra.mxu0 %v665_v63  ;;  %v285_v31 = vadd.s32 4294967272, %v266_v18  ;;  %v269_v33 = vsub.s32 %v266_v18, %v268_v20  ;;  %v274_v34 = vsub.s32 %v271_v23, %v268_v20  ;;  %p759_p12 = pnand %p758_p6, %p1242_p11  ;;  %p766_p0 = por %p765_p10, %p764_p8 }
  0x47   : > { %228 = vadd.xlane.f32.xlu0 %v227_v43  ;;  %v245_v52 = vadd.f32 %v244_v47, %v1071_v44  ;;  %v252_v55 = vadd.f32 %v251_v51, %v1080_v49  ;;  %667 = vmatprep.subr.bf16.mxu0 %v828_v60  ;;  %v281_v36 = vsub.s32 %v278_v24, %v268_v20 }
  0x48   : > { %v236_v56 = vadd.f32 %v235_v53, %v1083_v50  ;;  %v288_v41 = vsub.s32 %v285_v31, %v268_v20  ;;  %p760_p13 = pneg %p759_p12 }
  0x49   : > { %246 = vadd.xlane.f32.xlu1 %v245_v52  ;;  %v253_v58 = vadd.f32 %v252_v55, %v1089_v54 }
  0x4a   : > { %669 = vmatpush3.bf16.msra.mxu0 %v668_v10  ;;  %v453_v10 = vsub.s32 0, %v268_v20  ;;  %p767_p2 = pnand %p766_p0, %p760_p13 }
  0x4b   : > { %237 = vadd.xlane.f32.xlu0 %v236_v56  ;;  %v254_v59 = vadd.f32 %v253_v58, %v1094_v57  ;;  %v366_v56 = vld [vmem:[%s1234_s2] sm:$0x3] }
  0x4c   : > { %660 = vmatpush3.msk.msra.mxu1 %vm371_vm5, %v366_v56 }
  0x4d   : > { %255 = vadd.xlane.f32.xlu1 %v254_v59 }
  0xd4   : > { %v229_v28 = vpop.xlane.xlu0 %228 }
  0xd5   : > { %v270_v43 = vrot.slane %v229_v28, %v269_v33 }
  0xd6   : > { %v247_v39 = vpop.xlane.xlu1 %246 }
  0xd7   : > { %v282_v47 = vrot.slane %v247_v39, %v281_v36 }
  0xd8   : > { %v238_v40 = vpop.xlane.xlu0 %237 }
  0xd9   : > { %v275_v46 = vrot.slane %v238_v40, %v274_v34 }
  0xda   : > { %v256_v51 = vpop.xlane.xlu1 %255 }
  0xdb   : > { %v277_v48 = vsel %vm276_vm1, %v275_v46, %v270_v43  ;;  %v289_v52 = vrot.slane %v256_v51, %v288_v41 }
  0xdc   : > { %v284_v53 = vsel %vm283_vm2, %v282_v47, %v277_v48 }
  0xdd   : > { %v291_v55 = vsel %vm290_vm3, %v289_v52, %v284_v53 }
  0xde   : > { %657 = vmatmul.mubr.msk.f32.vlgmr.msra.gmra.mrb[0].mxu0 %vm292_vm4, %v291_v55 }
 0x1b1   : > { %v361_v58 = vpop.f32.mrb[0].mxu0 }
 0x1b2   : > { %v365_v59 = vmax.f32 %v361_v58, 0.0  ;;  %v658_v60 = vpop.f32.mrb[1].mxu0 }
 0x1b4   : > { %662 = vmatmul.mubr.msk.f32.vlgmr.msra.gmra.mrb[0].mxu1 %vm367_vm6, %v365_v59 }
 0x287   : > { %v441_v61 = vpop.f32.mrb[0].mxu1 }
 0x288   : > { %v633_v62 = vmul.f32 -1.442695, %v441_v61  ;;  %v663_v63 = vpop.f32.mrb[1].mxu1 }
 0x28a   : > { %723 = vpow2.f32 %v633_v62 }
 0x294   : > { %v724_v3 = vpop.eup %723 }
 0x295   : > { %v448_v6 = vadd.f32 1.0, %v724_v3 }
 0x297   : > { %725 = vrcp.f32 %v448_v6 }
 0x2a1   : > { %v726_v11 = vpop.eup %725 }
 0x2a2   : > { %v454_v16 = vrot.slane %v726_v11, %v453_v10 }
 0x2a4   : > { %460 = vbcast.lane.b32.xlu1 %v454_v16, 264  ;;  %456 = vbcast.lane.b32.xlu0 %v454_v16, 256 }
 0x2a8   : > { %464 = vbcast.lane.b32.xlu1 %v454_v16, 272 }
 0x2ac   : > { %468 = vbcast.lane.b32.xlu1 %v454_v16, 280 }
 0x316   : > { %v461_v18 = vpop.permute.xlu1 %460  ;;  %v457_v23 = vpop.permute.xlu0 %456 }
 0x317   : > { %v478_v24 = vmul.f32 %v461_v18, %v1004_v13  ;;  %v479_v28 = vmul.f32 %v461_v18, %v1007_v14  ;;  %v480_v31 = vmul.f32 %v461_v18, %v1014_v17  ;;  %v481_v33 = vmul.f32 %v461_v18, %v1026_v22 }
 0x318   : > { %v482_v34 = vmul.f32 %v461_v18, %v1044_v30  ;;  %v483_v20 = vmul.f32 %v461_v18, %v1061_v38  ;;  %v484_v36 = vmul.f32 %v461_v18, %v1074_v45  ;;  %v485_v39 = vmul.f32 %v461_v18, %v1083_v50 }
 0x319   : > { %510 = vst [vmem:[%s1123_s27 + $0x40] sm:$0xff] %v478_v24  ;;  %511 = vst [vmem:[%s1123_s27 + $0x48] sm:$0xff] %v479_v28  ;;  %v470_v13 = vmul.f32 %v457_v23, %v971_v0  ;;  %v471_v14 = vmul.f32 %v457_v23, %v974_v1  ;;  %v472_v17 = vmul.f32 %v457_v23, %v977_v2 }
 0x31a   : > { %512 = vst [vmem:[%s1123_s27 + $0x50] sm:$0xff] %v480_v31  ;;  %513 = vst [vmem:[%s1123_s27 + $0x58] sm:$0xff] %v481_v33  ;;  %v473_v22 = vmul.f32 %v457_v23, %v982_v4  ;;  %v474_v30 = vmul.f32 %v457_v23, %v995_v9  ;;  %v475_v38 = vmul.f32 %v457_v23, %v1010_v15  ;;  %v465_v45 = vpop.permute.xlu1 %464 }
 0x31b   : > { %514 = vst [vmem:[%s1123_s27 + $0x60] sm:$0xff] %v482_v34  ;;  %515 = vst [vmem:[%s1123_s27 + $0x68] sm:$0xff] %v483_v20  ;;  %v476_v0 = vmul.f32 %v457_v23, %v1019_v19  ;;  %v477_v1 = vmul.f32 %v457_v23, %v1049_v32  ;;  %v486_v2 = vmul.f32 %v465_v45, %v985_v5 }
 0x31c   : > { %516 = vst [vmem:[%s1123_s27 + $0x70] sm:$0xff] %v484_v36  ;;  %517 = vst [vmem:[%s1123_s27 + $0x78] sm:$0xff] %v485_v39  ;;  %v487_v4 = vmul.f32 %v465_v45, %v989_v7  ;;  %v488_v9 = vmul.f32 %v465_v45, %v992_v8  ;;  %v489_v15 = vmul.f32 %v465_v45, %v1001_v12 }
 0x31d   : > { %502 = vst [vmem:[%s1123_s27] sm:$0xff] %v470_v13  ;;  %503 = vst [vmem:[%s1123_s27 + $0x8] sm:$0xff] %v471_v14  ;;  %v490_v19 = vmul.f32 %v465_v45, %v1023_v21  ;;  %v491_v5 = vmul.f32 %v465_v45, %v1041_v29  ;;  %v492_v32 = vmul.f32 %v465_v45, %v1058_v37 }
 0x31e   : > { %504 = vst [vmem:[%s1123_s27 + $0x10] sm:$0xff] %v472_v17  ;;  %505 = vst [vmem:[%s1123_s27 + $0x18] sm:$0xff] %v473_v22  ;;  %v493_v7 = vmul.f32 %v465_v45, %v1071_v44  ;;  %v469_v8 = vpop.permute.xlu1 %468 }
 0x31f   : > { %506 = vst [vmem:[%s1123_s27 + $0x20] sm:$0xff] %v474_v30  ;;  %507 = vst [vmem:[%s1123_s27 + $0x28] sm:$0xff] %v475_v38  ;;  %v494_v12 = vmul.f32 %v469_v8, %v1031_v25  ;;  %v495_v21 = vmul.f32 %v469_v8, %v1034_v26  ;;  %v496_v29 = vmul.f32 %v469_v8, %v1037_v27 }
 0x320   : > { %508 = vst [vmem:[%s1123_s27 + $0x30] sm:$0xff] %v476_v0  ;;  %509 = vst [vmem:[%s1123_s27 + $0x38] sm:$0xff] %v477_v1  ;;  %v497_v37 = vmul.f32 %v469_v8, %v1054_v35  ;;  %v498_v25 = vmul.f32 %v469_v8, %v1067_v42  ;;  %v499_v26 = vmul.f32 %v469_v8, %v1080_v49 }
 0x321   : > { %518 = vst [vmem:[%s1123_s27 + $0x80] sm:$0xff] %v486_v2  ;;  %519 = vst [vmem:[%s1123_s27 + $0x88] sm:$0xff] %v487_v4  ;;  %v500_v44 = vmul.f32 %v469_v8, %v1089_v54  ;;  %v501_v27 = vmul.f32 %v469_v8, %v1094_v57 }
 0x322   : > { %520 = vst [vmem:[%s1123_s27 + $0x90] sm:$0xff] %v488_v9  ;;  %521 = vst [vmem:[%s1123_s27 + $0x98] sm:$0xff] %v489_v15 }
 0x323   : > { %522 = vst [vmem:[%s1123_s27 + $0xa0] sm:$0xff] %v490_v19  ;;  %523 = vst [vmem:[%s1123_s27 + $0xa8] sm:$0xff] %v491_v5 }
 0x324   : > { %524 = vst [vmem:[%s1123_s27 + $0xb0] sm:$0xff] %v492_v32  ;;  %525 = vst [vmem:[%s1123_s27 + $0xb8] sm:$0xff] %v493_v7 }
 0x325   : > { %526 = vst [vmem:[%s1123_s27 + $0xc0] sm:$0xff] %v494_v12  ;;  %527 = vst [vmem:[%s1123_s27 + $0xc8] sm:$0xff] %v495_v21 }
 0x326   : > { %528 = vst [vmem:[%s1123_s27 + $0xd0] sm:$0xff] %v496_v29  ;;  %529 = vst [vmem:[%s1123_s27 + $0xd8] sm:$0xff] %v497_v37 }
 0x327   : > { %530 = vst [vmem:[%s1123_s27 + $0xe0] sm:$0xff] %v498_v25  ;;  %531 = vst [vmem:[%s1123_s27 + $0xe8] sm:$0xff] %v499_v26 }
 0x328   : > { %532 = vst [vmem:[%s1123_s27 + $0xf0] sm:$0xff] %v500_v44  ;;  %533 = vst [vmem:[%s1123_s27 + $0xf8] sm:$0xff] %v501_v27 }
 0x329   : > { %770 = shalt.err (!%p767_p2)
}
 0x32a   : > { %s771_s7 = scalar_lea.hbm %s1174_s9, 4096  ;;  %s775_s19 = scalar_lea.hbm %s1235_s3, 8192 }
 0x32b   : > { %p772_p4 = scmp.ne.s32.totalorder %s1174_s9, %s771_s7  ;;  %p776_p9 = scmp.lt.u32.totalorder %s1174_s9, %s1235_s3 }
 0x32c   : > { %p777_p1 = scmp.lt.u32.totalorder %s775_s19, %s771_s7  ;;  %p779_p6 = scmp.lt.u32.totalorder %s771_s7, %s1174_s9 }
 0x32d   : > { %p773_p5 = pnand %p772_p4, %p1242_p11 }
 0x32e   : > { %p778_p3 = por %p777_p1, %p776_p9 }
 0x32f   : > { %p774_p7 = pneg %p773_p5 }
 0x330   : > { %p780_p12 = por %p779_p6, %p778_p3 }
 0x332   : > { %p781_p13 = pnand %p780_p12, %p774_p7 }
 0x334   : > { %784 = shalt.err (!%p781_p13)
}
 0x335   : > { %s832_s26 = smov 1024   ;;  %s833_s27 = smov 64  }
 0x336   : > { %672 = dma.vmem_to_hbm [thread:$0]  (%p1242_p11), %s1176_s29, 4096, %s1174_s9, %s535_s10, %s832_s26, %s832_s26, %s833_s27  }
 0x337 PF: > { %s563_s28 = sand.u32 1, %s811_s12   ;;  %p1243_p8 = scmp.ne.s32.totalorder %s1240_s25, 0 }
 0x338   : > { %p1244_p10 = scmp.ge.s32.totalorder %s823_s15, 2  ;;  %s564_s16 = scalar_lea.sflag [#allocation4], %s563_s28 }
 0x33a   : > { %p679_p0 = pnand %p1244_p10, %p1243_p8 }
 0x33c   : > { %806 = dma.done.wait (!%p679_p0), %s564_s16, 4096  }
 0x33d   : > { %808 = vsyncadd (!%p679_p0), %s564_s16, 4294963200  ;;  %p16_p2 = scmp.ge.s32.totalorder %s879_s18, 4   ;;  %s1245_s12 = smov %s815_s13 }
 0x33e   : > { %s1246_s13 = smov %s819_s14  ;;  %s1247_s14 = smov %s891_s21 }
 0x33f   : > { %s1248_s15 = smov %s879_s18  ;;  %18 = sbr.rel (!%p16_p2) target bundleno = 5 (0x5), region = 77 }
 0x346   :  { %569 = vsyncpa [#allocation3], 1 }
 0x347   :  { %571 = vsyncpa [#allocation3 + $0x1], 1 }
 0x348   :  { %572 = vsyncpa [#allocation4], 1 }
 0x349   :  { %574 = vsyncpa [#allocation4 + $0x1], 1 }

</bundles_post_ra>
